<compile_context>
chip_gen: v5e
topology: v5e:2x2
jax: 0.10.0
libtpu: 0.0.40
codegen_flags: <defaults>
</compile_context>

<pallas_src>
import functools

import jax
import jax.numpy as jnp
from jax.experimental import pallas as pl
from jax.experimental.pallas import tpu as pltpu

_HALO = 128  # halo block width; covers kernel sizes up to 129; lane tile unit


def _round_up(x, m):
    return ((x + m - 1) // m) * m


def _conv_tile(xm_ref, xh_ref, w_ref):
    """Conv1d (no bias) on one (C_in, T_blk) tile + 128-col halo.

    Returns an f32 (C_out, T_blk) tile.  One MXU matmul per kernel tap:
    bf16 operands, f32 accumulation; all slices are static.
    """
    C_in, T_blk = xm_ref.shape
    K, C_out, _ = w_ref.shape
    x = jnp.concatenate([xm_ref[...], xh_ref[...]], axis=-1)   # bf16 (C_in, T_blk+HALO)
    acc = jnp.zeros((C_out, T_blk), jnp.float32)
    for k in range(K):                                          # static unroll, K small
        acc = acc + jnp.dot(w_ref[k], x[:, k:k + T_blk],
                            preferred_element_type=jnp.float32)
    return acc


def _conv_stats_kernel(xm_ref, xh_ref, w_ref, stats_ref, *, t_valid_last):
    """Pass 1: conv tile (no bias) -> per-channel [sum, sum_sq] accumulator.

    Output block index is constant along the T-tile axis, so the stats block
    stays resident in VMEM and is written to HBM once per batch element.
    """
    tb = pl.program_id(1)
    nt = pl.num_programs(1)

    @pl.when(tb == 0)
    def _():
        stats_ref[...] = jnp.zeros_like(stats_ref)

    z = _conv_tile(xm_ref, xh_ref, w_ref)                       # f32 (C_out, T_blk)

    def _accum(zt):
        s1 = jnp.sum(zt, axis=-1, keepdims=True)
        s2 = jnp.sum(zt * zt, axis=-1, keepdims=True)
        stats_ref[...] += jnp.concatenate([s1, s2], axis=-1)

    if t_valid_last is None:          # T_out multiple of T_blk: never mask
        _accum(z)
    else:                             # mask padded tail cols, last tile only
        @pl.when(tb < nt - 1)
        def _():
            _accum(z)

        @pl.when(tb == nt - 1)
        def _():
            col = jax.lax.broadcasted_iota(jnp.int32, z.shape, 1)
            _accum(jnp.where(col < t_valid_last, z, 0.0))


def _conv_bn_relu_kernel(xm_ref, xh_ref, w_ref, p_ref, o_ref):
    """Pass 2: recompute conv tile, folded BN affine + ReLU, lane-dense store."""
    z = _conv_tile(xm_ref, xh_ref, w_ref)
    scale = p_ref[:, 0:1]                                       # (C_out, 1)
    shift = p_ref[:, 1:2]
    o_ref[...] = jnp.maximum(z * scale + shift, 0.0).astype(o_ref.dtype)


def conv_bn_relu(h, weight, bias, gamma, beta, pad, *, out_dtype=jnp.bfloat16,
                 t_blk_max=2048, eps=1e-5):
    """One Conv_BN layer (training-mode BN + ReLU). h: (B,C_in,T) -> (B,C_out,T_out)."""
    B, C_in, T = h.shape
    C_out, _, K = weight.shape
    T_out = T + 2 * pad - K + 1
    assert T_out >= 1 and K - 1 <= _HALO

    t_blk_max = _round_up(t_blk_max, _HALO)
    T_blk = min(t_blk_max, _round_up(T_out, _HALO))
    if B == 1 and T_blk > _HALO:
        # keep >= 2 T tiles so a v7x second TensorCore has parallel work in pass 2
        T_blk = min(T_blk, max(_HALO, _round_up((T_out + 1) // 2, _HALO)))
    assert T_blk % _HALO == 0
    num_t = (T_out + T_blk - 1) // T_blk
    Tp = num_t * T_blk                      # padded output length (lane tiles)
    T_x = Tp + _HALO                        # padded input length (incl. halo)
    t_valid_last = None if Tp == T_out else T_out - (num_t - 1) * T_blk

    # bf16 activations/weights for HBM/VMEM/MXU; f32 accumulation in-kernel.
    x = h.astype(jnp.bfloat16)
    if pad > 0 or x.shape[-1] != T_x:
        # TODO(synk): fuse this pad into the producing layer's pass 2 (write into a
        # buffer pre-sized for the next layer) to drop one activation HBM round trip.
        x = jnp.pad(x, ((0, 0), (0, 0), (pad, T_x - T - pad)))
    w = jnp.transpose(weight, (2, 0, 1)).astype(jnp.bfloat16)   # (K, C_out, C_in)

    grid = (B, num_t)
    xm_spec = pl.BlockSpec((None, C_in, T_blk), lambda b, t: (b, 0, t))
    xh_spec = pl.BlockSpec((None, C_in, _HALO),
                           lambda b, t: (b, 0, (t + 1) * (T_blk // _HALO)))
    w_spec = pl.BlockSpec((K, C_out, C_in), lambda b, t: (0, 0, 0))

    conv_flops = 2 * B * Tp * C_out * C_in * K
    x_bytes = B * C_in * (Tp + num_t * _HALO) * 2               # main + halo reads
    w_bytes = K * C_out * C_in * 2
    vmem_cap = 32 * 1024 * 1024                                 # safe on v5e/v6e/v7x

    # ---- pass 1: per-channel sum / sum-of-squares of the (bias-free) conv ----
    stats = pl.pallas_call(
        functools.partial(_conv_stats_kernel, t_valid_last=t_valid_last),
        out_shape=jax.ShapeDtypeStruct((B, C_out, 2), jnp.float32),
        grid=grid,
        in_specs=[xm_spec, xh_spec, w_spec],
        out_specs=pl.BlockSpec((None, C_out, 2), lambda b, t: (b, 0, 0)),
        compiler_params=pltpu.CompilerParams(
            dimension_semantics=("parallel", "arbitrary"),
            vmem_limit_bytes=vmem_cap),
        cost_estimate=pl.CostEstimate(flops=conv_flops, transcendentals=0,
                                      bytes_accessed=x_bytes + w_bytes),
    )(x, x, w)

    # Global batch statistics (training-mode BN, biased variance).  The conv
    # bias only shifts the mean, so it is folded analytically here:
    #   y = scale * z_nobias + shift,  scale = gamma*rsqrt(var+eps),
    #   shift = beta - scale*mean_z   (mean_c = mean_z + bias cancels the bias).
    s = jnp.sum(stats, axis=0)                                  # (C_out, 2)
    n = float(B * T_out)
    mean_z = s[:, 0] / n
    var = jnp.maximum(s[:, 1] / n - mean_z * mean_z, 0.0)
    scale = gamma * jax.lax.rsqrt(var + eps)
    shift = beta - scale * mean_z
    p = jnp.stack([scale, shift], axis=-1).astype(jnp.float32)  # (C_out, 2) packed

    # ---- pass 2: conv -> folded BN affine -> ReLU, lane-dense (C_out, T) output ----
    out = pl.pallas_call(
        _conv_bn_relu_kernel,
        out_shape=jax.ShapeDtypeStruct((B, C_out, Tp), out_dtype),
        grid=grid,
        in_specs=[xm_spec, xh_spec, w_spec,
                  pl.BlockSpec((C_out, 2), lambda b, t: (0, 0))],
        out_specs=pl.BlockSpec((None, C_out, T_blk), lambda b, t: (b, 0, t)),
        compiler_params=pltpu.CompilerParams(
            dimension_semantics=("parallel", "parallel"),
            vmem_limit_bytes=vmem_cap),
        cost_estimate=pl.CostEstimate(
            flops=conv_flops, transcendentals=0,
            bytes_accessed=x_bytes + w_bytes
            + B * C_out * Tp * jnp.dtype(out_dtype).itemsize),
    )(x, x, w, p)

    return out[:, :, :T_out]


# ---------------------------------------------------------------------------
# Encoder (mirror of the PyTorch module)
# ---------------------------------------------------------------------------
def init_encoder_params(key, nb_inputs, channel_list, ksize_list):
    """PyTorch-style uniform init for conv, (1, 0) for BatchNorm affine."""
    chans = [nb_inputs] + list(channel_list)
    params = []
    for c_in, c_out, k in zip(chans[:-1], chans[1:], ksize_list):
        key, kw, kb = jax.random.split(key, 3)
        bound = (c_in * k) ** -0.5
        w = jax.random.uniform(kw, (c_out, c_in, k), jnp.float32, -bound, bound)
        b = jax.random.uniform(kb, (c_out,), jnp.float32, -bound, bound)
        params.append(dict(weight=w, bias=b,
                           gamma=jnp.ones((c_out,), jnp.float32),
                           beta=jnp.zeros((c_out,), jnp.float32)))
    return params


def encoder_forward(x, params, pad_list=None):
    """x: (B, T, nb_inputs) -> (B, C_last, T_last), matching Encoder.forward."""
    n = len(params)
    if pad_list is None or len(pad_list) == 0:
        pad_list = [0] * n
    h = jnp.transpose(x, (0, 2, 1))                   # torch.transpose(x, 1, 2)
    for i, (p, pad) in enumerate(zip(params, pad_list)):
        out_dtype = jnp.float32 if i == n - 1 else jnp.bfloat16
        h = conv_bn_relu(h, p["weight"], p["bias"], p["gamma"], p["beta"], pad,
                         out_dtype=out_dtype)
    return h


def _ref_forward(x, params, pad_list, eps=1e-5):
    """Pure-JAX f32 reference (conv -> train-mode BN -> ReLU), for sanity check."""
    h = jnp.transpose(x, (0, 2, 1))
    for p, pad in zip(params, pad_list):
        c = jax.lax.conv_general_dilated(
            h, p["weight"], window_strides=(1,), padding=[(pad, pad)],
            dimension_numbers=("NCH", "OIH", "NCH")) + p["bias"][None, :, None]
        mean = jnp.mean(c, axis=(0, 2), keepdims=True)
        var = jnp.mean((c - mean) ** 2, axis=(0, 2), keepdims=True)
        hn = (c - mean) * jax.lax.rsqrt(var + eps)
        h = jnp.maximum(hn * p["gamma"][None, :, None] + p["beta"][None, :, None], 0.0)
    return h


if __name__ == "__main__":
    # Encoder(nb_inputs=4, channel_list=[8, 16], ksize_list=[3, 3], pad_list=[1, 0])
    nb_inputs = 4
    channel_list = [8, 16]
    ksize_list = [3, 3]
    pad_list = [1, 0]

    key = jax.random.PRNGKey(0)
    kx, kp = jax.random.split(key)
    x = jax.random.normal(kx, (2, 16, nb_inputs), dtype=jnp.float32)  # (B, T, C_in)

    params = init_encoder_params(kp, nb_inputs, channel_list, ksize_list)

    fwd = jax.jit(functools.partial(encoder_forward, pad_list=pad_list))
    out = fwd(x, params)
    jax.block_until_ready(out)

    assert out.shape == (2, 16, 14), out.shape      # (B, C_out=16, T_out=14)
    assert bool(jnp.all(out >= 0.0))                # ReLU output
    # bf16 activation path vs f32 reference: loose tolerance.
    ref = _ref_forward(x, params, pad_list)
    assert bool(jnp.allclose(out, ref, rtol=1e-1, atol=1e-1)), \
        float(jnp.max(jnp.abs(out - ref)))
    print("KERNEL_OK")
</pallas_src>

<mosaic_0001>
module attributes {stable_mosaic.version = 11 : i64} {
  func.func @_conv_bn_relu_kernel(%arg0: i32, %arg1: i32, %arg2: memref<1x4x128xbf16, #tpu.memory_space<vmem>>, %arg3: memref<1x4x128xbf16, #tpu.memory_space<vmem>>, %arg4: memref<3x8x4xbf16, #tpu.memory_space<vmem>>, %arg5: memref<8x2xf32, #tpu.memory_space<vmem>>, %arg6: memref<1x8x128xbf16, #tpu.memory_space<vmem>>) attributes {dimension_semantics = [#tpu.dimension_semantics<parallel>, #tpu.dimension_semantics<parallel>], iteration_bounds = array<i64: 2, 1>, scalar_prefetch = 0 : i64, scratch_operands = 0 : i64, tpu.core_type = #tpu.core_type<tc>, window_params = [{transform_indices = @transform_0, window_bounds = array<i64: 1, 4, 128>}, {transform_indices = @transform_1, window_bounds = array<i64: 1, 4, 128>}, {pipeline_mode = #tpu.pipeline_mode<synchronous>, transform_indices = @transform_2, window_bounds = array<i64: 3, 8, 4>}, {pipeline_mode = #tpu.pipeline_mode<synchronous>, transform_indices = @transform_3, window_bounds = array<i64: 8, 2>}, {transform_indices = @transform_4, window_bounds = array<i64: 1, 8, 128>}]} {
    %c0 = arith.constant 0 : index
    %c0_0 = arith.constant 0 : index
    %c0_1 = arith.constant 0 : index
    %0 = vector.load %arg2[%c0, %c0_0, %c0_1] : memref<1x4x128xbf16, #tpu.memory_space<vmem>>, vector<1x4x128xbf16>
    %1 = vector.shape_cast %0 : vector<1x4x128xbf16> to vector<4x128xbf16>
    %c0_2 = arith.constant 0 : index
    %c0_3 = arith.constant 0 : index
    %c0_4 = arith.constant 0 : index
    %2 = vector.load %arg3[%c0_2, %c0_3, %c0_4] : memref<1x4x128xbf16, #tpu.memory_space<vmem>>, vector<1x4x128xbf16>
    %3 = vector.shape_cast %2 : vector<1x4x128xbf16> to vector<4x128xbf16>
    %4 = tpu.concatenate %1, %3 in 1 : vector<4x128xbf16>, vector<4x128xbf16> -> vector<4x256xbf16>
    %cst = arith.constant 0.000000e+00 : f32
    %5 = vector.broadcast %cst : f32 to vector<8x128xf32>
    %c0_5 = arith.constant 0 : index
    %c0_6 = arith.constant 0 : index
    %c0_7 = arith.constant 0 : index
    %6 = vector.load %arg4[%c0_5, %c0_6, %c0_7] : memref<3x8x4xbf16, #tpu.memory_space<vmem>>, vector<1x8x4xbf16>
    %7 = vector.shape_cast %6 : vector<1x8x4xbf16> to vector<8x4xbf16>
    %8 = vector.extract_strided_slice %4 {offsets = [0, 0], sizes = [4, 128], strides = [1, 1]} : vector<4x256xbf16> to vector<4x128xbf16>
    %cst_8 = arith.constant dense<0.000000e+00> : vector<8x128xf32>
    %9 = tpu.matmul %7, %8, %cst_8 {dimension_numbers = #tpu.dot_dimension_numbers<[1], [0], [0], [1], [0, 0, 1, 1], [], []>} : vector<8x4xbf16>, vector<4x128xbf16>, vector<8x128xf32> -> vector<8x128xf32>
    %10 = arith.addf %5, %9 : vector<8x128xf32>
    %c1 = arith.constant 1 : index
    %c0_9 = arith.constant 0 : index
    %c0_10 = arith.constant 0 : index
    %11 = vector.load %arg4[%c1, %c0_9, %c0_10] : memref<3x8x4xbf16, #tpu.memory_space<vmem>>, vector<1x8x4xbf16>
    %12 = vector.shape_cast %11 : vector<1x8x4xbf16> to vector<8x4xbf16>
    %13 = vector.extract_strided_slice %4 {offsets = [0, 1], sizes = [4, 128], strides = [1, 1]} : vector<4x256xbf16> to vector<4x128xbf16>
    %cst_11 = arith.constant dense<0.000000e+00> : vector<8x128xf32>
    %14 = tpu.matmul %12, %13, %cst_11 {dimension_numbers = #tpu.dot_dimension_numbers<[1], [0], [0], [1], [0, 0, 1, 1], [], []>} : vector<8x4xbf16>, vector<4x128xbf16>, vector<8x128xf32> -> vector<8x128xf32>
    %15 = arith.addf %10, %14 : vector<8x128xf32>
    %c2 = arith.constant 2 : index
    %c0_12 = arith.constant 0 : index
    %c0_13 = arith.constant 0 : index
    %16 = vector.load %arg4[%c2, %c0_12, %c0_13] : memref<3x8x4xbf16, #tpu.memory_space<vmem>>, vector<1x8x4xbf16>
    %17 = vector.shape_cast %16 : vector<1x8x4xbf16> to vector<8x4xbf16>
    %18 = vector.extract_strided_slice %4 {offsets = [0, 2], sizes = [4, 128], strides = [1, 1]} : vector<4x256xbf16> to vector<4x128xbf16>
    %cst_14 = arith.constant dense<0.000000e+00> : vector<8x128xf32>
    %19 = tpu.matmul %17, %18, %cst_14 {dimension_numbers = #tpu.dot_dimension_numbers<[1], [0], [0], [1], [0, 0, 1, 1], [], []>} : vector<8x4xbf16>, vector<4x128xbf16>, vector<8x128xf32> -> vector<8x128xf32>
    %20 = arith.addf %15, %19 : vector<8x128xf32>
    %c0_15 = arith.constant 0 : index
    %c0_16 = arith.constant 0 : index
    %21 = vector.load %arg5[%c0_15, %c0_16] : memref<8x2xf32, #tpu.memory_space<vmem>>, vector<8x1xf32>
    %c0_17 = arith.constant 0 : index
    %c1_18 = arith.constant 1 : index
    %22 = vector.load %arg5[%c0_17, %c1_18] : memref<8x2xf32, #tpu.memory_space<vmem>>, vector<8x1xf32>
    %23 = vector.broadcast %21 : vector<8x1xf32> to vector<8x128xf32>
    %24 = arith.mulf %20, %23 : vector<8x128xf32>
    %25 = vector.broadcast %22 : vector<8x1xf32> to vector<8x128xf32>
    %26 = arith.addf %24, %25 : vector<8x128xf32>
    %cst_19 = arith.constant 0.000000e+00 : f32
    %27 = vector.broadcast %cst_19 : f32 to vector<8x128xf32>
    %28 = arith.maximumf %26, %27 : vector<8x128xf32>
    %29 = arith.truncf %28 : vector<8x128xf32> to vector<8x128xbf16>
    %c0_20 = arith.constant 0 : index
    %c0_21 = arith.constant 0 : index
    %c0_22 = arith.constant 0 : index
    %30 = vector.load %arg6[%c0_20, %c0_21, %c0_22] : memref<1x8x128xbf16, #tpu.memory_space<vmem>>, vector<1x8x128xbf16>
    %31 = vector.shape_cast %30 : vector<1x8x128xbf16> to vector<8x128xbf16>
    %32 = vector.shape_cast %29 : vector<8x128xbf16> to vector<1x8x128xbf16>
    tpu.vector_store %arg6[%c0_20, %c0_21, %c0_22], %32 {strides = array<i32>} : memref<1x8x128xbf16, #tpu.memory_space<vmem>>, vector<1x8x128xbf16>,
    return
  }
  func.func @transform_0(%arg0: i32, %arg1: i32) -> (i32, i32, i32) {
    %c0_i32 = arith.constant 0 : i32
    %c0_i32_0 = arith.constant 0 : i32
    return %arg0, %c0_i32, %arg1 : i32, i32, i32
  }
  func.func @transform_1(%arg0: i32, %arg1: i32) -> (i32, i32, i32) {
    %c1_i32 = arith.constant 1 : i32
    %0 = arith.addi %arg1, %c1_i32 : i32
    %c1_i32_0 = arith.constant 1 : i32
    %1 = arith.muli %0, %c1_i32_0 : i32
    %c0_i32 = arith.constant 0 : i32
    %c0_i32_1 = arith.constant 0 : i32
    return %arg0, %c0_i32, %1 : i32, i32, i32
  }
  func.func @transform_2(%arg0: i32, %arg1: i32) -> (i32, i32, i32) {
    %c0_i32 = arith.constant 0 : i32
    %c0_i32_0 = arith.constant 0 : i32
    %c0_i32_1 = arith.constant 0 : i32
    %c0_i32_2 = arith.constant 0 : i32
    return %c0_i32, %c0_i32_0, %c0_i32_1 : i32, i32, i32
  }
  func.func @transform_3(%arg0: i32, %arg1: i32) -> (i32, i32) {
    %c0_i32 = arith.constant 0 : i32
    %c0_i32_0 = arith.constant 0 : i32
    %c0_i32_1 = arith.constant 0 : i32
    return %c0_i32, %c0_i32_0 : i32, i32
  }
  func.func @transform_4(%arg0: i32, %arg1: i32) -> (i32, i32, i32) {
    %c0_i32 = arith.constant 0 : i32
    %c0_i32_0 = arith.constant 0 : i32
    return %arg0, %c0_i32, %arg1 : i32, i32, i32
  }
}

module attributes {stable_mosaic.version = 11 : i64} {
  func.func @_conv_bn_relu_kernel(%arg0: i32, %arg1: i32, %arg2: memref<1x8x128xbf16, #tpu.memory_space<vmem>>, %arg3: memref<1x8x128xbf16, #tpu.memory_space<vmem>>, %arg4: memref<3x16x8xbf16, #tpu.memory_space<vmem>>, %arg5: memref<16x2xf32, #tpu.memory_space<vmem>>, %arg6: memref<1x16x128xf32, #tpu.memory_space<vmem>>) attributes {dimension_semantics = [#tpu.dimension_semantics<parallel>, #tpu.dimension_semantics<parallel>], iteration_bounds = array<i64: 2, 1>, scalar_prefetch = 0 : i64, scratch_operands = 0 : i64, tpu.core_type = #tpu.core_type<tc>, window_params = [{transform_indices = @transform_0, window_bounds = array<i64: 1, 8, 128>}, {transform_indices = @transform_1, window_bounds = array<i64: 1, 8, 128>}, {pipeline_mode = #tpu.pipeline_mode<synchronous>, transform_indices = @transform_2, window_bounds = array<i64: 3, 16, 8>}, {pipeline_mode = #tpu.pipeline_mode<synchronous>, transform_indices = @transform_3, window_bounds = array<i64: 16, 2>}, {transform_indices = @transform_4, window_bounds = array<i64: 1, 16, 128>}]} {
    %c0 = arith.constant 0 : index
    %c0_0 = arith.constant 0 : index
    %c0_1 = arith.constant 0 : index
    %0 = vector.load %arg2[%c0, %c0_0, %c0_1] : memref<1x8x128xbf16, #tpu.memory_space<vmem>>, vector<1x8x128xbf16>
    %1 = vector.shape_cast %0 : vector<1x8x128xbf16> to vector<8x128xbf16>
    %c0_2 = arith.constant 0 : index
    %c0_3 = arith.constant 0 : index
    %c0_4 = arith.constant 0 : index
    %2 = vector.load %arg3[%c0_2, %c0_3, %c0_4] : memref<1x8x128xbf16, #tpu.memory_space<vmem>>, vector<1x8x128xbf16>
    %3 = vector.shape_cast %2 : vector<1x8x128xbf16> to vector<8x128xbf16>
    %4 = tpu.concatenate %1, %3 in 1 : vector<8x128xbf16>, vector<8x128xbf16> -> vector<8x256xbf16>
    %cst = arith.constant 0.000000e+00 : f32
    %5 = vector.broadcast %cst : f32 to vector<16x128xf32>
    %c0_5 = arith.constant 0 : index
    %c0_6 = arith.constant 0 : index
    %c0_7 = arith.constant 0 : index
    %6 = vector.load %arg4[%c0_5, %c0_6, %c0_7] : memref<3x16x8xbf16, #tpu.memory_space<vmem>>, vector<1x16x8xbf16>
    %7 = vector.shape_cast %6 : vector<1x16x8xbf16> to vector<16x8xbf16>
    %8 = vector.extract_strided_slice %4 {offsets = [0, 0], sizes = [8, 128], strides = [1, 1]} : vector<8x256xbf16> to vector<8x128xbf16>
    %cst_8 = arith.constant dense<0.000000e+00> : vector<16x128xf32>
    %9 = tpu.matmul %7, %8, %cst_8 {dimension_numbers = #tpu.dot_dimension_numbers<[1], [0], [0], [1], [0, 0, 1, 1], [], []>} : vector<16x8xbf16>, vector<8x128xbf16>, vector<16x128xf32> -> vector<16x128xf32>
    %10 = arith.addf %5, %9 : vector<16x128xf32>
    %c1 = arith.constant 1 : index
    %c0_9 = arith.constant 0 : index
    %c0_10 = arith.constant 0 : index
    %11 = vector.load %arg4[%c1, %c0_9, %c0_10] : memref<3x16x8xbf16, #tpu.memory_space<vmem>>, vector<1x16x8xbf16>
    %12 = vector.shape_cast %11 : vector<1x16x8xbf16> to vector<16x8xbf16>
    %13 = vector.extract_strided_slice %4 {offsets = [0, 1], sizes = [8, 128], strides = [1, 1]} : vector<8x256xbf16> to vector<8x128xbf16>
    %cst_11 = arith.constant dense<0.000000e+00> : vector<16x128xf32>
    %14 = tpu.matmul %12, %13, %cst_11 {dimension_numbers = #tpu.dot_dimension_numbers<[1], [0], [0], [1], [0, 0, 1, 1], [], []>} : vector<16x8xbf16>, vector<8x128xbf16>, vector<16x128xf32> -> vector<16x128xf32>
    %15 = arith.addf %10, %14 : vector<16x128xf32>
    %c2 = arith.constant 2 : index
    %c0_12 = arith.constant 0 : index
    %c0_13 = arith.constant 0 : index
    %16 = vector.load %arg4[%c2, %c0_12, %c0_13] : memref<3x16x8xbf16, #tpu.memory_space<vmem>>, vector<1x16x8xbf16>
    %17 = vector.shape_cast %16 : vector<1x16x8xbf16> to vector<16x8xbf16>
    %18 = vector.extract_strided_slice %4 {offsets = [0, 2], sizes = [8, 128], strides = [1, 1]} : vector<8x256xbf16> to vector<8x128xbf16>
    %cst_14 = arith.constant dense<0.000000e+00> : vector<16x128xf32>
    %19 = tpu.matmul %17, %18, %cst_14 {dimension_numbers = #tpu.dot_dimension_numbers<[1], [0], [0], [1], [0, 0, 1, 1], [], []>} : vector<16x8xbf16>, vector<8x128xbf16>, vector<16x128xf32> -> vector<16x128xf32>
    %20 = arith.addf %15, %19 : vector<16x128xf32>
    %c0_15 = arith.constant 0 : index
    %c0_16 = arith.constant 0 : index
    %21 = vector.load %arg5[%c0_15, %c0_16] : memref<16x2xf32, #tpu.memory_space<vmem>>, vector<16x1xf32>
    %c0_17 = arith.constant 0 : index
    %c1_18 = arith.constant 1 : index
    %22 = vector.load %arg5[%c0_17, %c1_18] : memref<16x2xf32, #tpu.memory_space<vmem>>, vector<16x1xf32>
    %23 = vector.broadcast %21 : vector<16x1xf32> to vector<16x128xf32>
    %24 = arith.mulf %20, %23 : vector<16x128xf32>
    %25 = vector.broadcast %22 : vector<16x1xf32> to vector<16x128xf32>
    %26 = arith.addf %24, %25 : vector<16x128xf32>
    %cst_19 = arith.constant 0.000000e+00 : f32
    %27 = vector.broadcast %cst_19 : f32 to vector<16x128xf32>
    %28 = arith.maximumf %26, %27 : vector<16x128xf32>
    %c0_20 = arith.constant 0 : index
    %c0_21 = arith.constant 0 : index
    %c0_22 = arith.constant 0 : index
    %29 = vector.load %arg6[%c0_20, %c0_21, %c0_22] : memref<1x16x128xf32, #tpu.memory_space<vmem>>, vector<1x16x128xf32>
    %30 = vector.shape_cast %29 : vector<1x16x128xf32> to vector<16x128xf32>
    %31 = vector.shape_cast %28 : vector<16x128xf32> to vector<1x16x128xf32>
    tpu.vector_store %arg6[%c0_20, %c0_21, %c0_22], %31 {strides = array<i32>} : memref<1x16x128xf32, #tpu.memory_space<vmem>>, vector<1x16x128xf32>,
    return
  }
  func.func @transform_0(%arg0: i32, %arg1: i32) -> (i32, i32, i32) {
    %c0_i32 = arith.constant 0 : i32
    %c0_i32_0 = arith.constant 0 : i32
    return %arg0, %c0_i32, %arg1 : i32, i32, i32
  }
  func.func @transform_1(%arg0: i32, %arg1: i32) -> (i32, i32, i32) {
    %c1_i32 = arith.constant 1 : i32
    %0 = arith.addi %arg1, %c1_i32 : i32
    %c1_i32_0 = arith.constant 1 : i32
    %1 = arith.muli %0, %c1_i32_0 : i32
    %c0_i32 = arith.constant 0 : i32
    %c0_i32_1 = arith.constant 0 : i32
    return %arg0, %c0_i32, %1 : i32, i32, i32
  }
  func.func @transform_2(%arg0: i32, %arg1: i32) -> (i32, i32, i32) {
    %c0_i32 = arith.constant 0 : i32
    %c0_i32_0 = arith.constant 0 : i32
    %c0_i32_1 = arith.constant 0 : i32
    %c0_i32_2 = arith.constant 0 : i32
    return %c0_i32, %c0_i32_0, %c0_i32_1 : i32, i32, i32
  }
  func.func @transform_3(%arg0: i32, %arg1: i32) -> (i32, i32) {
    %c0_i32 = arith.constant 0 : i32
    %c0_i32_0 = arith.constant 0 : i32
    %c0_i32_1 = arith.constant 0 : i32
    return %c0_i32, %c0_i32_0 : i32, i32
  }
  func.func @transform_4(%arg0: i32, %arg1: i32) -> (i32, i32, i32) {
    %c0_i32 = arith.constant 0 : i32
    %c0_i32_0 = arith.constant 0 : i32
    return %arg0, %c0_i32, %arg1 : i32, i32, i32
  }
}

module attributes {stable_mosaic.version = 11 : i64} {
  func.func @_conv_stats_kernel(%arg0: i32, %arg1: i32, %arg2: memref<1x4x128xbf16, #tpu.memory_space<vmem>>, %arg3: memref<1x4x128xbf16, #tpu.memory_space<vmem>>, %arg4: memref<3x8x4xbf16, #tpu.memory_space<vmem>>, %arg5: memref<1x8x2xf32, #tpu.memory_space<vmem>>) attributes {dimension_semantics = [#tpu.dimension_semantics<parallel>, #tpu.dimension_semantics<arbitrary>], iteration_bounds = array<i64: 2, 1>, scalar_prefetch = 0 : i64, scratch_operands = 0 : i64, tpu.core_type = #tpu.core_type<tc>, window_params = [{transform_indices = @transform_0, window_bounds = array<i64: 1, 4, 128>}, {transform_indices = @transform_1, window_bounds = array<i64: 1, 4, 128>}, {pipeline_mode = #tpu.pipeline_mode<synchronous>, transform_indices = @transform_2, window_bounds = array<i64: 3, 8, 4>}, {transform_indices = @transform_3, window_bounds = array<i64: 1, 8, 2>}]} {
    %c0_i32 = arith.constant 0 : i32
    %0 = arith.cmpi eq, %arg1, %c0_i32 : i32
    %1 = arith.extui %0 : i1 to i32
    %c0_i32_0 = arith.constant 0 : i32
    %2 = arith.cmpi ne, %1, %c0_i32_0 : i32
    scf.if %2 {
      %cst_20 = arith.constant 0.000000e+00 : f32
      %30 = vector.broadcast %cst_20 : f32 to vector<8x2xf32>
      %c0_21 = arith.constant 0 : index
      %c0_22 = arith.constant 0 : index
      %c0_23 = arith.constant 0 : index
      %31 = vector.load %arg5[%c0_21, %c0_22, %c0_23] : memref<1x8x2xf32, #tpu.memory_space<vmem>>, vector<1x8x2xf32>
      %32 = vector.shape_cast %31 : vector<1x8x2xf32> to vector<8x2xf32>
      %33 = vector.shape_cast %30 : vector<8x2xf32> to vector<1x8x2xf32>
      tpu.vector_store %arg5[%c0_21, %c0_22, %c0_23], %33 {strides = array<i32>} : memref<1x8x2xf32, #tpu.memory_space<vmem>>, vector<1x8x2xf32>,
    } else {
    }
    %c0 = arith.constant 0 : index
    %c0_1 = arith.constant 0 : index
    %c0_2 = arith.constant 0 : index
    %3 = vector.load %arg2[%c0, %c0_1, %c0_2] : memref<1x4x128xbf16, #tpu.memory_space<vmem>>, vector<1x4x128xbf16>
    %4 = vector.shape_cast %3 : vector<1x4x128xbf16> to vector<4x128xbf16>
    %c0_3 = arith.constant 0 : index
    %c0_4 = arith.constant 0 : index
    %c0_5 = arith.constant 0 : index
    %5 = vector.load %arg3[%c0_3, %c0_4, %c0_5] : memref<1x4x128xbf16, #tpu.memory_space<vmem>>, vector<1x4x128xbf16>
    %6 = vector.shape_cast %5 : vector<1x4x128xbf16> to vector<4x128xbf16>
    %7 = tpu.concatenate %4, %6 in 1 : vector<4x128xbf16>, vector<4x128xbf16> -> vector<4x256xbf16>
    %cst = arith.constant 0.000000e+00 : f32
    %8 = vector.broadcast %cst : f32 to vector<8x128xf32>
    %c0_6 = arith.constant 0 : index
    %c0_7 = arith.constant 0 : index
    %c0_8 = arith.constant 0 : index
    %9 = vector.load %arg4[%c0_6, %c0_7, %c0_8] : memref<3x8x4xbf16, #tpu.memory_space<vmem>>, vector<1x8x4xbf16>
    %10 = vector.shape_cast %9 : vector<1x8x4xbf16> to vector<8x4xbf16>
    %11 = vector.extract_strided_slice %7 {offsets = [0, 0], sizes = [4, 128], strides = [1, 1]} : vector<4x256xbf16> to vector<4x128xbf16>
    %cst_9 = arith.constant dense<0.000000e+00> : vector<8x128xf32>
    %12 = tpu.matmul %10, %11, %cst_9 {dimension_numbers = #tpu.dot_dimension_numbers<[1], [0], [0], [1], [0, 0, 1, 1], [], []>} : vector<8x4xbf16>, vector<4x128xbf16>, vector<8x128xf32> -> vector<8x128xf32>
    %13 = arith.addf %8, %12 : vector<8x128xf32>
    %c1 = arith.constant 1 : index
    %c0_10 = arith.constant 0 : index
    %c0_11 = arith.constant 0 : index
    %14 = vector.load %arg4[%c1, %c0_10, %c0_11] : memref<3x8x4xbf16, #tpu.memory_space<vmem>>, vector<1x8x4xbf16>
    %15 = vector.shape_cast %14 : vector<1x8x4xbf16> to vector<8x4xbf16>
    %16 = vector.extract_strided_slice %7 {offsets = [0, 1], sizes = [4, 128], strides = [1, 1]} : vector<4x256xbf16> to vector<4x128xbf16>
    %cst_12 = arith.constant dense<0.000000e+00> : vector<8x128xf32>
    %17 = tpu.matmul %15, %16, %cst_12 {dimension_numbers = #tpu.dot_dimension_numbers<[1], [0], [0], [1], [0, 0, 1, 1], [], []>} : vector<8x4xbf16>, vector<4x128xbf16>, vector<8x128xf32> -> vector<8x128xf32>
    %18 = arith.addf %13, %17 : vector<8x128xf32>
    %c2 = arith.constant 2 : index
    %c0_13 = arith.constant 0 : index
    %c0_14 = arith.constant 0 : index
    %19 = vector.load %arg4[%c2, %c0_13, %c0_14] : memref<3x8x4xbf16, #tpu.memory_space<vmem>>, vector<1x8x4xbf16>
    %20 = vector.shape_cast %19 : vector<1x8x4xbf16> to vector<8x4xbf16>
    %21 = vector.extract_strided_slice %7 {offsets = [0, 2], sizes = [4, 128], strides = [1, 1]} : vector<4x256xbf16> to vector<4x128xbf16>
    %cst_15 = arith.constant dense<0.000000e+00> : vector<8x128xf32>
    %22 = tpu.matmul %20, %21, %cst_15 {dimension_numbers = #tpu.dot_dimension_numbers<[1], [0], [0], [1], [0, 0, 1, 1], [], []>} : vector<8x4xbf16>, vector<4x128xbf16>, vector<8x128xf32> -> vector<8x128xf32>
    %23 = arith.addf %18, %22 : vector<8x128xf32>
    %c0_i32_16 = arith.constant 0 : i32
    %24 = arith.cmpi slt, %arg1, %c0_i32_16 : i32
    %25 = arith.extui %24 : i1 to i32
    %c0_i32_17 = arith.constant 0 : i32
    %26 = arith.cmpi ne, %25, %c0_i32_17 : i32
    scf.if %26 {
      %cst_20 = arith.constant dense<0.000000e+00> : vector<8xf32>
      %30 = vector.multi_reduction <add>, %23, %cst_20 [1] : vector<8x128xf32> to vector<8xf32>
      %31 = vector.shape_cast %30 : vector<8xf32> to vector<8x1xf32>
      %32 = arith.mulf %23, %23 : vector<8x128xf32>
      %cst_21 = arith.constant dense<0.000000e+00> : vector<8xf32>
      %33 = vector.multi_reduction <add>, %32, %cst_21 [1] : vector<8x128xf32> to vector<8xf32>
      %34 = vector.shape_cast %33 : vector<8xf32> to vector<8x1xf32>
      %c0_22 = arith.constant 0 : index
      %c0_23 = arith.constant 0 : index
      %c0_24 = arith.constant 0 : index
      %35 = vector.load %arg5[%c0_22, %c0_23, %c0_24] : memref<1x8x2xf32, #tpu.memory_space<vmem>>, vector<1x8x2xf32>
      %36 = vector.shape_cast %35 : vector<1x8x2xf32> to vector<8x2xf32>
      %37 = tpu.concatenate %31, %34 in 1 : vector<8x1xf32>, vector<8x1xf32> -> vector<8x2xf32>
      %38 = arith.addf %36, %37 : vector<8x2xf32>
      %c0_25 = arith.constant 0 : index
      %c0_26 = arith.constant 0 : index
      %c0_27 = arith.constant 0 : index
      %39 = vector.load %arg5[%c0_25, %c0_26, %c0_27] : memref<1x8x2xf32, #tpu.memory_space<vmem>>, vector<1x8x2xf32>
      %40 = vector.shape_cast %39 : vector<1x8x2xf32> to vector<8x2xf32>
      %41 = vector.shape_cast %38 : vector<8x2xf32> to vector<1x8x2xf32>
      tpu.vector_store %arg5[%c0_25, %c0_26, %c0_27], %41 {strides = array<i32>} : memref<1x8x2xf32, #tpu.memory_space<vmem>>, vector<1x8x2xf32>,
    } else {
    }
    %c0_i32_18 = arith.constant 0 : i32
    %27 = arith.cmpi eq, %arg1, %c0_i32_18 : i32
    %28 = arith.extui %27 : i1 to i32
    %c0_i32_19 = arith.constant 0 : i32
    %29 = arith.cmpi ne, %28, %c0_i32_19 : i32
    scf.if %29 {
      %30 = tpu.iota {dimensions = array<i32: 1>} : vector<8x128xi32>
      %c16_i32 = arith.constant 16 : i32
      %31 = vector.broadcast %c16_i32 : i32 to vector<8x128xi32>
      %32 = arith.cmpi slt, %30, %31 : vector<8x128xi32>
      %cst_20 = arith.constant 0.000000e+00 : f32
      %33 = vector.broadcast %cst_20 : f32 to vector<8x128xf32>
      %34 = arith.select %32, %23, %33 : vector<8x128xi1>, vector<8x128xf32>
      %cst_21 = arith.constant dense<0.000000e+00> : vector<8xf32>
      %35 = vector.multi_reduction <add>, %34, %cst_21 [1] : vector<8x128xf32> to vector<8xf32>
      %36 = vector.shape_cast %35 : vector<8xf32> to vector<8x1xf32>
      %37 = arith.mulf %34, %34 : vector<8x128xf32>
      %cst_22 = arith.constant dense<0.000000e+00> : vector<8xf32>
      %38 = vector.multi_reduction <add>, %37, %cst_22 [1] : vector<8x128xf32> to vector<8xf32>
      %39 = vector.shape_cast %38 : vector<8xf32> to vector<8x1xf32>
      %c0_23 = arith.constant 0 : index
      %c0_24 = arith.constant 0 : index
      %c0_25 = arith.constant 0 : index
      %40 = vector.load %arg5[%c0_23, %c0_24, %c0_25] : memref<1x8x2xf32, #tpu.memory_space<vmem>>, vector<1x8x2xf32>
      %41 = vector.shape_cast %40 : vector<1x8x2xf32> to vector<8x2xf32>
      %42 = tpu.concatenate %36, %39 in 1 : vector<8x1xf32>, vector<8x1xf32> -> vector<8x2xf32>
      %43 = arith.addf %41, %42 : vector<8x2xf32>
      %c0_26 = arith.constant 0 : index
      %c0_27 = arith.constant 0 : index
      %c0_28 = arith.constant 0 : index
      %44 = vector.load %arg5[%c0_26, %c0_27, %c0_28] : memref<1x8x2xf32, #tpu.memory_space<vmem>>, vector<1x8x2xf32>
      %45 = vector.shape_cast %44 : vector<1x8x2xf32> to vector<8x2xf32>
      %46 = vector.shape_cast %43 : vector<8x2xf32> to vector<1x8x2xf32>
      tpu.vector_store %arg5[%c0_26, %c0_27, %c0_28], %46 {strides = array<i32>} : memref<1x8x2xf32, #tpu.memory_space<vmem>>, vector<1x8x2xf32>,
    } else {
    }
    return
  }
  func.func @transform_0(%arg0: i32, %arg1: i32) -> (i32, i32, i32) {
    %c0_i32 = arith.constant 0 : i32
    %c0_i32_0 = arith.constant 0 : i32
    return %arg0, %c0_i32, %arg1 : i32, i32, i32
  }
  func.func @transform_1(%arg0: i32, %arg1: i32) -> (i32, i32, i32) {
    %c1_i32 = arith.constant 1 : i32
    %0 = arith.addi %arg1, %c1_i32 : i32
    %c1_i32_0 = arith.constant 1 : i32
    %1 = arith.muli %0, %c1_i32_0 : i32
    %c0_i32 = arith.constant 0 : i32
    %c0_i32_1 = arith.constant 0 : i32
    return %arg0, %c0_i32, %1 : i32, i32, i32
  }
  func.func @transform_2(%arg0: i32, %arg1: i32) -> (i32, i32, i32) {
    %c0_i32 = arith.constant 0 : i32
    %c0_i32_0 = arith.constant 0 : i32
    %c0_i32_1 = arith.constant 0 : i32
    %c0_i32_2 = arith.constant 0 : i32
    return %c0_i32, %c0_i32_0, %c0_i32_1 : i32, i32, i32
  }
  func.func @transform_3(%arg0: i32, %arg1: i32) -> (i32, i32, i32) {
    %c0_i32 = arith.constant 0 : i32
    %c0_i32_0 = arith.constant 0 : i32
    %c0_i32_1 = arith.constant 0 : i32
    return %arg0, %c0_i32, %c0_i32_0 : i32, i32, i32
  }
}

module attributes {stable_mosaic.version = 11 : i64} {
  func.func @_conv_stats_kernel(%arg0: i32, %arg1: i32, %arg2: memref<1x8x128xbf16, #tpu.memory_space<vmem>>, %arg3: memref<1x8x128xbf16, #tpu.memory_space<vmem>>, %arg4: memref<3x16x8xbf16, #tpu.memory_space<vmem>>, %arg5: memref<1x16x2xf32, #tpu.memory_space<vmem>>) attributes {dimension_semantics = [#tpu.dimension_semantics<parallel>, #tpu.dimension_semantics<arbitrary>], iteration_bounds = array<i64: 2, 1>, scalar_prefetch = 0 : i64, scratch_operands = 0 : i64, tpu.core_type = #tpu.core_type<tc>, window_params = [{transform_indices = @transform_0, window_bounds = array<i64: 1, 8, 128>}, {transform_indices = @transform_1, window_bounds = array<i64: 1, 8, 128>}, {pipeline_mode = #tpu.pipeline_mode<synchronous>, transform_indices = @transform_2, window_bounds = array<i64: 3, 16, 8>}, {transform_indices = @transform_3, window_bounds = array<i64: 1, 16, 2>}]} {
    %c0_i32 = arith.constant 0 : i32
    %0 = arith.cmpi eq, %arg1, %c0_i32 : i32
    %1 = arith.extui %0 : i1 to i32
    %c0_i32_0 = arith.constant 0 : i32
    %2 = arith.cmpi ne, %1, %c0_i32_0 : i32
    scf.if %2 {
      %cst_20 = arith.constant 0.000000e+00 : f32
      %30 = vector.broadcast %cst_20 : f32 to vector<16x2xf32>
      %c0_21 = arith.constant 0 : index
      %c0_22 = arith.constant 0 : index
      %c0_23 = arith.constant 0 : index
      %31 = vector.load %arg5[%c0_21, %c0_22, %c0_23] : memref<1x16x2xf32, #tpu.memory_space<vmem>>, vector<1x16x2xf32>
      %32 = vector.shape_cast %31 : vector<1x16x2xf32> to vector<16x2xf32>
      %33 = vector.shape_cast %30 : vector<16x2xf32> to vector<1x16x2xf32>
      tpu.vector_store %arg5[%c0_21, %c0_22, %c0_23], %33 {strides = array<i32>} : memref<1x16x2xf32, #tpu.memory_space<vmem>>, vector<1x16x2xf32>,
    } else {
    }
    %c0 = arith.constant 0 : index
    %c0_1 = arith.constant 0 : index
    %c0_2 = arith.constant 0 : index
    %3 = vector.load %arg2[%c0, %c0_1, %c0_2] : memref<1x8x128xbf16, #tpu.memory_space<vmem>>, vector<1x8x128xbf16>
    %4 = vector.shape_cast %3 : vector<1x8x128xbf16> to vector<8x128xbf16>
    %c0_3 = arith.constant 0 : index
    %c0_4 = arith.constant 0 : index
    %c0_5 = arith.constant 0 : index
    %5 = vector.load %arg3[%c0_3, %c0_4, %c0_5] : memref<1x8x128xbf16, #tpu.memory_space<vmem>>, vector<1x8x128xbf16>
    %6 = vector.shape_cast %5 : vector<1x8x128xbf16> to vector<8x128xbf16>
    %7 = tpu.concatenate %4, %6 in 1 : vector<8x128xbf16>, vector<8x128xbf16> -> vector<8x256xbf16>
    %cst = arith.constant 0.000000e+00 : f32
    %8 = vector.broadcast %cst : f32 to vector<16x128xf32>
    %c0_6 = arith.constant 0 : index
    %c0_7 = arith.constant 0 : index
    %c0_8 = arith.constant 0 : index
    %9 = vector.load %arg4[%c0_6, %c0_7, %c0_8] : memref<3x16x8xbf16, #tpu.memory_space<vmem>>, vector<1x16x8xbf16>
    %10 = vector.shape_cast %9 : vector<1x16x8xbf16> to vector<16x8xbf16>
    %11 = vector.extract_strided_slice %7 {offsets = [0, 0], sizes = [8, 128], strides = [1, 1]} : vector<8x256xbf16> to vector<8x128xbf16>
    %cst_9 = arith.constant dense<0.000000e+00> : vector<16x128xf32>
    %12 = tpu.matmul %10, %11, %cst_9 {dimension_numbers = #tpu.dot_dimension_numbers<[1], [0], [0], [1], [0, 0, 1, 1], [], []>} : vector<16x8xbf16>, vector<8x128xbf16>, vector<16x128xf32> -> vector<16x128xf32>
    %13 = arith.addf %8, %12 : vector<16x128xf32>
    %c1 = arith.constant 1 : index
    %c0_10 = arith.constant 0 : index
    %c0_11 = arith.constant 0 : index
    %14 = vector.load %arg4[%c1, %c0_10, %c0_11] : memref<3x16x8xbf16, #tpu.memory_space<vmem>>, vector<1x16x8xbf16>
    %15 = vector.shape_cast %14 : vector<1x16x8xbf16> to vector<16x8xbf16>
    %16 = vector.extract_strided_slice %7 {offsets = [0, 1], sizes = [8, 128], strides = [1, 1]} : vector<8x256xbf16> to vector<8x128xbf16>
    %cst_12 = arith.constant dense<0.000000e+00> : vector<16x128xf32>
    %17 = tpu.matmul %15, %16, %cst_12 {dimension_numbers = #tpu.dot_dimension_numbers<[1], [0], [0], [1], [0, 0, 1, 1], [], []>} : vector<16x8xbf16>, vector<8x128xbf16>, vector<16x128xf32> -> vector<16x128xf32>
    %18 = arith.addf %13, %17 : vector<16x128xf32>
    %c2 = arith.constant 2 : index
    %c0_13 = arith.constant 0 : index
    %c0_14 = arith.constant 0 : index
    %19 = vector.load %arg4[%c2, %c0_13, %c0_14] : memref<3x16x8xbf16, #tpu.memory_space<vmem>>, vector<1x16x8xbf16>
    %20 = vector.shape_cast %19 : vector<1x16x8xbf16> to vector<16x8xbf16>
    %21 = vector.extract_strided_slice %7 {offsets = [0, 2], sizes = [8, 128], strides = [1, 1]} : vector<8x256xbf16> to vector<8x128xbf16>
    %cst_15 = arith.constant dense<0.000000e+00> : vector<16x128xf32>
    %22 = tpu.matmul %20, %21, %cst_15 {dimension_numbers = #tpu.dot_dimension_numbers<[1], [0], [0], [1], [0, 0, 1, 1], [], []>} : vector<16x8xbf16>, vector<8x128xbf16>, vector<16x128xf32> -> vector<16x128xf32>
    %23 = arith.addf %18, %22 : vector<16x128xf32>
    %c0_i32_16 = arith.constant 0 : i32
    %24 = arith.cmpi slt, %arg1, %c0_i32_16 : i32
    %25 = arith.extui %24 : i1 to i32
    %c0_i32_17 = arith.constant 0 : i32
    %26 = arith.cmpi ne, %25, %c0_i32_17 : i32
    scf.if %26 {
      %cst_20 = arith.constant dense<0.000000e+00> : vector<16xf32>
      %30 = vector.multi_reduction <add>, %23, %cst_20 [1] : vector<16x128xf32> to vector<16xf32>
      %31 = vector.shape_cast %30 : vector<16xf32> to vector<16x1xf32>
      %32 = arith.mulf %23, %23 : vector<16x128xf32>
      %cst_21 = arith.constant dense<0.000000e+00> : vector<16xf32>
      %33 = vector.multi_reduction <add>, %32, %cst_21 [1] : vector<16x128xf32> to vector<16xf32>
      %34 = vector.shape_cast %33 : vector<16xf32> to vector<16x1xf32>
      %c0_22 = arith.constant 0 : index
      %c0_23 = arith.constant 0 : index
      %c0_24 = arith.constant 0 : index
      %35 = vector.load %arg5[%c0_22, %c0_23, %c0_24] : memref<1x16x2xf32, #tpu.memory_space<vmem>>, vector<1x16x2xf32>
      %36 = vector.shape_cast %35 : vector<1x16x2xf32> to vector<16x2xf32>
      %37 = tpu.concatenate %31, %34 in 1 : vector<16x1xf32>, vector<16x1xf32> -> vector<16x2xf32>
      %38 = arith.addf %36, %37 : vector<16x2xf32>
      %c0_25 = arith.constant 0 : index
      %c0_26 = arith.constant 0 : index
      %c0_27 = arith.constant 0 : index
      %39 = vector.load %arg5[%c0_25, %c0_26, %c0_27] : memref<1x16x2xf32, #tpu.memory_space<vmem>>, vector<1x16x2xf32>
      %40 = vector.shape_cast %39 : vector<1x16x2xf32> to vector<16x2xf32>
      %41 = vector.shape_cast %38 : vector<16x2xf32> to vector<1x16x2xf32>
      tpu.vector_store %arg5[%c0_25, %c0_26, %c0_27], %41 {strides = array<i32>} : memref<1x16x2xf32, #tpu.memory_space<vmem>>, vector<1x16x2xf32>,
    } else {
    }
    %c0_i32_18 = arith.constant 0 : i32
    %27 = arith.cmpi eq, %arg1, %c0_i32_18 : i32
    %28 = arith.extui %27 : i1 to i32
    %c0_i32_19 = arith.constant 0 : i32
    %29 = arith.cmpi ne, %28, %c0_i32_19 : i32
    scf.if %29 {
      %30 = tpu.iota {dimensions = array<i32: 1>} : vector<16x128xi32>
      %c14_i32 = arith.constant 14 : i32
      %31 = vector.broadcast %c14_i32 : i32 to vector<16x128xi32>
      %32 = arith.cmpi slt, %30, %31 : vector<16x128xi32>
      %cst_20 = arith.constant 0.000000e+00 : f32
      %33 = vector.broadcast %cst_20 : f32 to vector<16x128xf32>
      %34 = arith.select %32, %23, %33 : vector<16x128xi1>, vector<16x128xf32>
      %cst_21 = arith.constant dense<0.000000e+00> : vector<16xf32>
      %35 = vector.multi_reduction <add>, %34, %cst_21 [1] : vector<16x128xf32> to vector<16xf32>
      %36 = vector.shape_cast %35 : vector<16xf32> to vector<16x1xf32>
      %37 = arith.mulf %34, %34 : vector<16x128xf32>
      %cst_22 = arith.constant dense<0.000000e+00> : vector<16xf32>
      %38 = vector.multi_reduction <add>, %37, %cst_22 [1] : vector<16x128xf32> to vector<16xf32>
      %39 = vector.shape_cast %38 : vector<16xf32> to vector<16x1xf32>
      %c0_23 = arith.constant 0 : index
      %c0_24 = arith.constant 0 : index
      %c0_25 = arith.constant 0 : index
      %40 = vector.load %arg5[%c0_23, %c0_24, %c0_25] : memref<1x16x2xf32, #tpu.memory_space<vmem>>, vector<1x16x2xf32>
      %41 = vector.shape_cast %40 : vector<1x16x2xf32> to vector<16x2xf32>
      %42 = tpu.concatenate %36, %39 in 1 : vector<16x1xf32>, vector<16x1xf32> -> vector<16x2xf32>
      %43 = arith.addf %41, %42 : vector<16x2xf32>
      %c0_26 = arith.constant 0 : index
      %c0_27 = arith.constant 0 : index
      %c0_28 = arith.constant 0 : index
      %44 = vector.load %arg5[%c0_26, %c0_27, %c0_28] : memref<1x16x2xf32, #tpu.memory_space<vmem>>, vector<1x16x2xf32>
      %45 = vector.shape_cast %44 : vector<1x16x2xf32> to vector<16x2xf32>
      %46 = vector.shape_cast %43 : vector<16x2xf32> to vector<1x16x2xf32>
      tpu.vector_store %arg5[%c0_26, %c0_27, %c0_28], %46 {strides = array<i32>} : memref<1x16x2xf32, #tpu.memory_space<vmem>>, vector<1x16x2xf32>,
    } else {
    }
    return
  }
  func.func @transform_0(%arg0: i32, %arg1: i32) -> (i32, i32, i32) {
    %c0_i32 = arith.constant 0 : i32
    %c0_i32_0 = arith.constant 0 : i32
    return %arg0, %c0_i32, %arg1 : i32, i32, i32
  }
  func.func @transform_1(%arg0: i32, %arg1: i32) -> (i32, i32, i32) {
    %c1_i32 = arith.constant 1 : i32
    %0 = arith.addi %arg1, %c1_i32 : i32
    %c1_i32_0 = arith.constant 1 : i32
    %1 = arith.muli %0, %c1_i32_0 : i32
    %c0_i32 = arith.constant 0 : i32
    %c0_i32_1 = arith.constant 0 : i32
    return %arg0, %c0_i32, %1 : i32, i32, i32
  }
  func.func @transform_2(%arg0: i32, %arg1: i32) -> (i32, i32, i32) {
    %c0_i32 = arith.constant 0 : i32
    %c0_i32_0 = arith.constant 0 : i32
    %c0_i32_1 = arith.constant 0 : i32
    %c0_i32_2 = arith.constant 0 : i32
    return %c0_i32, %c0_i32_0, %c0_i32_1 : i32, i32, i32
  }
  func.func @transform_3(%arg0: i32, %arg1: i32) -> (i32, i32, i32) {
    %c0_i32 = arith.constant 0 : i32
    %c0_i32_0 = arith.constant 0 : i32
    %c0_i32_1 = arith.constant 0 : i32
    return %arg0, %c0_i32, %c0_i32_0 : i32, i32, i32
  }
}

</mosaic_0001>

<bundles_post_ra>
// kernel: encoder_forward.7
= control target key start
LH: loop header
LB: loop body
LE: loop exit
PB: predicated region body
PF: predicated region fallthrough
CT: control target
= control target key end

     0   :  { %s624_s15 = smov 0   ;;  %s626_s16 = smov 0   ;;  %s685_s0 = inlined_call_operand.vmem [shape: bf16[2,8,256], index: 0, kind: input, shape index: {}, may-alias: {0,1}]   ;;  %s686_s1 = inlined_call_operand.vmem [shape: bf16[2,8,256], index: 1, kind: input, shape index: {}, may-alias: {0,1}]   ;;  %s687_s2 = inlined_call_operand.vmem [shape: bf16[3,16,8], index: 2, kind: input, shape index: {}]   ;;  %s688_s3 = inlined_call_operand.vmem [shape: f32[16,2], index: 3, kind: input, shape index: {}]   ;;  %s689_s4 = inlined_call_operand.vmem [shape: f32[2,16,128], index: 4, kind: output, shape index: {}]  }
   0x1   :  { %s628_s17 = smov 0  }
   0x2 LB: > { %s26_s18 = sadd.s32 1, %s589_s16  ;;  %p504_p0 = scmp.ge.s32.totalorder %s593_s17, 1  ;;  %s593_s17 = sphi %s628_s17, %s14_s17   ;;  %s589_s16 = sphi %s626_s16, %s691_s16   ;;  %s585_s15 = sphi %s624_s15, %s690_s15  }
   0x3   : > { %p28_p1 = scmp.ge.s32.totalorder %s26_s18, 2  ;;  %p200_p2 = scmp.lt.s32.totalorder %s593_s17, 3 }
   0x5   : > { %s693_s18 = smov (%p28_p1, %s26_s18), 0  ;;  %p201_p3 = pnand %p504_p0, %p200_p2 }
   0x6   : > { %p241_p4 = scmp.lt.s32.totalorder (!%p201_p3), %s585_s15, 1  ;;  %s595_s24 = smov (!%p201_p3), 127  }
   0x7   : > { %204 = sbr.rel (%p201_p3) target bundleno = 293 (0x125), region = 36  ;;  %s596_s25 = smov (!%p201_p3), 126  }
   0xc   : > { %s695_s15 = smov (!%p241_p4, %s585_s15), 1  ;;  %vm292_vm0 = vcmask 1043456   ;;  %v536_v3 = vld [vmem:[%s687_s2] sm:$0xff]  ;;  %vm288_vm1 = vcmask 64512   ;;  %v372_v5 = vld [vmem:[%s688_s3 + $0x8] sm:$0xff]  ;;  %v597_v6 = vmov 1  }
   0xd   : > { %s532_s19 = sshll.u32 %s695_s15, 3  ;;  %v371_v4 = vld [vmem:[%s688_s3] sm:$0xff]  ;;  %569 = vset.pattern.permute.xlu0 %v597_v6  ;;  %570 = vset.pattern.permute.xlu1 %v597_v6  ;;  %v598_v7 = vmov 0   ;;  %vm286_vm2 = vcmask 1039360   ;;  %vm347_vm3 = vcmask 1031168   ;;  %v537_v16 = vld [vmem:[%s687_s2 + $0x8] sm:$0xff] }
   0xe   : > { %s248_s22 = scalar_lea.vmem %s685_s0, %s532_s19  ;;  %s534_s23 = sadd.s32 4, %s532_s19  ;;  %568 = vset.pattern.permute.xlu2 %v598_v7  ;;  %v538_v17 = vld [vmem:[%s687_s2 + $0x10] sm:$0xff] }
   0xf   : > { %v268_v0 = vld [vmem:[%s248_s22] sm:$0xf]  ;;  %s257_s28 = scalar_lea.vmem %s686_s1, %s534_s23  ;;  %375 = vperm.xlu2 %568, %v371_v4   ;;  %s535_s13 = sshll.u32 %s695_s15, 4 }
  0x10   : > { %282 = vrot.lane.b32.xlu1 %v268_v0, %s595_s24  ;;  %343 = vrot.lane.b32.xlu0 %v268_v0, %s596_s25  ;;  %v269_v1 = vld [vmem:[%s257_s28] sm:$0xf]  ;;  %v319_v2 = vsel %vm292_vm0, %v268_v0, 0  ;;  %s266_s20 = scalar_lea.vmem %s689_s4, %s535_s13 }
  0x11   : > { %328 = vmatpush.bf16.msra.mxu1 %v319_v2 }
  0x14   : > { %522 = vmatmul.msk.bf16.vlgmr.msra.gmra.mxu1 %vm288_vm1, %v536_v3 }
  0x17   : > { %380 = vperm.xlu2 %568, %v372_v5  }
  0x18   : > { %284 = vrot.lane.b32.xlu1 %v269_v1, %s595_s24  ;;  %345 = vrot.lane.b32.xlu0 %v269_v1, %s596_s25 }
  0x20   : > { %386 = vperm.xlu0 %569, %v371_v4   ;;  %390 = vperm.xlu1 %570, %v372_v5  }
  0x69   : > { %v376_v21 = vpop.permute.xlu2 %375 }
  0x71   : > { %v381_v33 = vpop.permute.xlu2 %380 }
  0x82   : > { %v283_v8 = vpop.permute.xlu1 %282  ;;  %v344_v9 = vpop.permute.xlu0 %343 }
  0x8a   : > { %v285_v10 = vpop.permute.xlu1 %284  ;;  %v346_v11 = vpop.permute.xlu0 %345 }
  0x8b   : > { %v287_v12 = vsel %vm286_vm2, %v283_v8, %v285_v10  ;;  %v348_v13 = vsel %vm347_vm3, %v344_v9, %v346_v11 }
  0x8c   : > { %v294_v14 = vsel %vm292_vm0, %v287_v12, 0  ;;  %v353_v15 = vsel %vm292_vm0, %v348_v13, 0 }
  0x8d   : > { %303 = vmatpush.bf16.msra.mxu0 %v294_v14  ;;  %362 = vmatpush.bf16.msra.mxu2 %v353_v15 }
  0x90   : > { %517 = vmatmul.msk.bf16.vlgmr.msra.gmra.mxu0 %vm288_vm1, %v537_v16  ;;  %529 = vmatmul.msk.bf16.vlgmr.msra.gmra.mxu2 %vm288_vm1, %v538_v17 }
  0x91   : > { %v330_v19 = vpop.f32.mrf.mxu1 }
  0x92   : > { %v387_v24 = vpop.permute.xlu0 %386  ;;  %v391_v34 = vpop.permute.xlu1 %390 }
  0x99   : > { %v332_v28 = vpop.f32.mrf.mxu1 }
 0x10d   : > { %v305_v18 = vpop.f32.mrf.mxu0 }
 0x10e   : > { %v331_v20 = vadd.f32 %v330_v19, %v305_v18 }
 0x113   : > { %v364_v22 = vpop.f32.mrf.mxu2 }
 0x114   : > { %v369_v23 = vadd.f32 %v364_v22, %v331_v20 }
 0x115   : > { %v307_v26 = vpop.f32.mrf.mxu0 }
 0x116   : > { %v383_v25 = vmul.f32 %v376_v21, %v369_v23  ;;  %v333_v29 = vadd.f32 %v332_v28, %v307_v26 }
 0x118   : > { %v393_v27 = vadd.f32 %v387_v24, %v383_v25 }
 0x11a   : > { %v395_v30 = vmax.f32 %v393_v27, 0.0 }
 0x11b   : > { %v366_v31 = vpop.f32.mrf.mxu2 }
 0x11c   : > { %397 = vst [vmem:[%s266_s20] sm:$0xff] %v395_v30  ;;  %v370_v32 = vadd.f32 %v366_v31, %v333_v29 }
 0x11e   : > { %v384_v35 = vmul.f32 %v381_v33, %v370_v32 }
 0x120   : > { %v394_v36 = vadd.f32 %v391_v34, %v384_v35 }
 0x122   : > { %v396_v37 = vmax.f32 %v394_v36, 0.0 }
 0x124   : > { %398 = vst [vmem:[%s266_s20 + $0x8] sm:$0xff] %v396_v37 }
 0x125 PF: > { %s14_s17 = sadd.s32 1, %s593_s17   ;;  %s690_s15 = smov %s589_s16 }
 0x126   : > { %p11_p5 = scmp.ge.s32.totalorder %s14_s17, 4   ;;  %s691_s16 = smov %s693_s18 }
 0x128   :  { %13 = sbr.rel (!%p11_p5) target bundleno = 2 (0x2), region = 71 }

// kernel: encoder_forward.5
= control target key start
LH: loop header
LB: loop body
LE: loop exit
PB: predicated region body
PF: predicated region fallthrough
CT: control target
= control target key end

     0   :  { %s562_s15 = smov 0   ;;  %s564_s16 = smov 0   ;;  %s621_s0 = inlined_call_operand.vmem [shape: bf16[2,4,256], index: 0, kind: input, shape index: {}, may-alias: {0,1}]   ;;  %s622_s1 = inlined_call_operand.vmem [shape: bf16[2,4,256], index: 1, kind: input, shape index: {}, may-alias: {0,1}]   ;;  %s623_s2 = inlined_call_operand.vmem [shape: bf16[3,8,4], index: 2, kind: input, shape index: {}]   ;;  %s624_s3 = inlined_call_operand.vmem [shape: f32[8,2], index: 3, kind: input, shape index: {}]   ;;  %s625_s4 = inlined_call_operand.vmem [shape: bf16[2,8,128], index: 4, kind: output, shape index: {}]  }
   0x1   :  { %s566_s17 = smov 0  }
   0x2 LB: > { %s26_s18 = sadd.s32 1, %s527_s16  ;;  %p461_p0 = scmp.ge.s32.totalorder %s531_s17, 1  ;;  %s531_s17 = sphi %s566_s17, %s14_s17   ;;  %s527_s16 = sphi %s564_s16, %s627_s16   ;;  %s523_s15 = sphi %s562_s15, %s626_s15  }
   0x3   : > { %p28_p1 = scmp.ge.s32.totalorder %s26_s18, 2  ;;  %p200_p2 = scmp.lt.s32.totalorder %s531_s17, 3 }
   0x5   : > { %s629_s18 = smov (%p28_p1, %s26_s18), 0  ;;  %p201_p3 = pnand %p461_p0, %p200_p2 }
   0x6   : > { %p240_p4 = scmp.lt.s32.totalorder (!%p201_p3), %s523_s15, 1  ;;  %s533_s24 = smov (!%p201_p3), 127  }
   0x7   : > { %204 = sbr.rel (%p201_p3) target bundleno = 287 (0x11f), region = 36  ;;  %s534_s25 = smov (!%p201_p3), 126  }
   0xc   : > { %s631_s15 = smov (!%p240_p4, %s523_s15), 1  ;;  %vm283_vm0 = vcmask 1041408   ;;  %v268_v3 = vld [vmem:[%s623_s2] sm:$0xf]  ;;  %vm279_vm1 = vcmask 31744   ;;  %v535_v5 = vmov 0  }
   0xd   : > { %s580_s19 = sshll.u32 %s631_s15, 2  ;;  %v347_v4 = vld [vmem:[%s624_s3] sm:$0xff]  ;;  %506 = vset.pattern.permute.xlu2 %v535_v5  ;;  %v536_v6 = vmov 1   ;;  %vm277_vm2 = vcmask 1039360   ;;  %vm325_vm3 = vcmask 1031168  }
   0xe   : > { %s247_s22 = scalar_lea.vmem %s621_s0, %s580_s19  ;;  %s476_s23 = sadd.s32 2, %s580_s19  ;;  %508 = vset.pattern.permute.xlu0 %v536_v6  ;;  %350 = vperm.xlu2 %506, %v347_v4   ;;  %v467_v15 = vld [vmem:[%s623_s2 + $0x4] sm:$0xf]  ;;  %v470_v16 = vld [vmem:[%s623_s2 + $0x8] sm:$0xf] }
   0xf   : > { %v266_v0 = vld [vmem:[%s247_s22] sm:$0x3]  ;;  %s256_s28 = scalar_lea.vmem %s622_s1, %s476_s23  ;;  %s264_s13 = scalar_lea.vmem %s625_s4, %s580_s19 }
  0x10   : > { %273 = vrot.lane.b32.xlu1 %v266_v0, %s533_s24  ;;  %321 = vrot.lane.b32.xlu0 %v266_v0, %s534_s25  ;;  %v267_v1 = vld [vmem:[%s256_s28] sm:$0x3]  ;;  %v304_v2 = vsel %vm283_vm0, %v266_v0, 0 }
  0x11   : > { %313 = vmatpush.bf16.msra.mxu1 %v304_v2 }
  0x14   : > { %469 = vmatmul.msk.bf16.vlgmr.msra.gmra.mxu1 %vm279_vm1, %v268_v3 }
  0x16   : > { %507 = vset.pattern.permute.xlu2 %v536_v6 }
  0x17   : > { %355 = vperm.xlu2 %507, %v347_v4  }
  0x18   : > { %275 = vrot.lane.b32.xlu1 %v267_v1, %s533_s24  ;;  %323 = vrot.lane.b32.xlu0 %v267_v1, %s534_s25 }
  0x68   : > { %v351_v19 = vpop.permute.xlu2 %350 }
  0x71   : > { %v356_v25 = vpop.permute.xlu2 %355 }
  0x82   : > { %v274_v7 = vpop.permute.xlu1 %273  ;;  %v322_v8 = vpop.permute.xlu0 %321 }
  0x8a   : > { %v276_v9 = vpop.permute.xlu1 %275  ;;  %v324_v10 = vpop.permute.xlu0 %323 }
  0x8b   : > { %v278_v11 = vsel %vm277_vm2, %v274_v7, %v276_v9  ;;  %v326_v12 = vsel %vm325_vm3, %v322_v8, %v324_v10 }
  0x8c   : > { %v285_v13 = vsel %vm283_vm0, %v278_v11, 0  ;;  %v331_v14 = vsel %vm283_vm0, %v326_v12, 0 }
  0x8d   : > { %294 = vmatpush.bf16.msra.mxu0 %v285_v13  ;;  %340 = vmatpush.bf16.msra.mxu2 %v331_v14 }
  0x90   : > { %468 = vmatmul.msk.bf16.vlgmr.msra.gmra.mxu0 %vm279_vm1, %v467_v15  ;;  %471 = vmatmul.msk.bf16.vlgmr.msra.gmra.mxu2 %vm279_vm1, %v470_v16 }
  0x91   : > { %v315_v17 = vpop.f32.mrf.mxu1 }
  0x99   : > { %v317_v18 = vpop.f32.mrf.mxu1 }
 0x10d   : > { %v296_v20 = vpop.f32.mrf.mxu0 }
 0x10e   : > { %v316_v21 = vadd.f32 %v315_v17, %v296_v20 }
 0x113   : > { %v342_v22 = vpop.f32.mrf.mxu2 }
 0x114   : > { %v346_v23 = vadd.f32 %v342_v22, %v316_v21 }
 0x115   : > { %v298_v24 = vpop.f32.mrf.mxu0 }
 0x116   : > { %v353_v26 = vmul.f32 %v351_v19, %v346_v23 }
 0x118   : > { %v358_v27 = vadd.f32 %v356_v25, %v353_v26 }
 0x11a   : > { %v359_v28 = vmax.f32 %v358_v27, 0.0 }
 0x11b   : > { %v344_v29 = vpop.f32.mrf.mxu2 }
 0x11c   : > { %v360_v30 = vpack.c.bf16 %v359_v28, %v359_v28 }
 0x11e   : > { %361 = vst [vmem:[%s264_s13] sm:$0xf] %v360_v30 }
 0x11f PF: > { %s14_s17 = sadd.s32 1, %s531_s17   ;;  %s626_s15 = smov %s527_s16 }
 0x120   : > { %p11_p5 = scmp.ge.s32.totalorder %s14_s17, 4   ;;  %s627_s16 = smov %s629_s18 }
 0x122   :  { %13 = sbr.rel (!%p11_p5) target bundleno = 2 (0x2), region = 71 }

// kernel: encoder_forward.4
= control target key start
LH: loop header
LB: loop body
LE: loop exit
PB: predicated region body
PF: predicated region fallthrough
CT: control target
= control target key end

     0   :  { %s531_s12 = smov 0   ;;  %s533_s13 = smov 0   ;;  %s583_s0 = inlined_call_operand.vmem [shape: bf16[2,4,256], index: 0, kind: input, shape index: {}, may-alias: {0,1}]   ;;  %s584_s1 = inlined_call_operand.vmem [shape: bf16[2,4,256], index: 1, kind: input, shape index: {}, may-alias: {0,1}]   ;;  %s585_s2 = inlined_call_operand.vmem [shape: bf16[3,8,4], index: 2, kind: input, shape index: {}]   ;;  %s586_s3 = inlined_call_operand.vmem [shape: f32[2,8,2], index: 3, kind: output, shape index: {}]  }
   0x1   :  { %s535_s14 = smov 0  }
   0x2 LB: > { %s25_s15 = sadd.s32 1, %s502_s13  ;;  %p440_p0 = scmp.ge.s32.totalorder %s506_s14, 1  ;;  %s506_s14 = sphi %s535_s14, %s13_s14   ;;  %s502_s13 = sphi %s533_s13, %s588_s13   ;;  %s498_s12 = sphi %s531_s12, %s587_s12  }
   0x3   : > { %p27_p1 = scmp.ge.s32.totalorder %s25_s15, 2  ;;  %p173_p2 = scmp.lt.s32.totalorder %s506_s14, 3 }
   0x5   : > { %s590_s15 = smov (%p27_p1, %s25_s15), 0  ;;  %p174_p3 = pnand %p440_p0, %p173_p2 }
   0x6   : > { %p208_p4 = scmp.lt.s32.totalorder (!%p174_p3), %s498_s12, 1  ;;  %s508_s21 = smov (!%p174_p3), 127  }
   0x7   : > { %177 = sbr.rel (%p174_p3) target bundleno = 407 (0x197), region = 32  ;;  %s509_s22 = smov (!%p174_p3), 126  }
   0xc   : > { %s592_s12 = smov (!%p208_p4, %s498_s12), 1  ;;  %vm254_vm0 = vcmask 1041408   ;;  %v239_v3 = vld [vmem:[%s585_s2] sm:$0xf]  ;;  %vm250_vm1 = vcmask 31744   ;;  %vm248_vm2 = vcmask 1039360   ;;  %v336_v16 = vlaneseq }
   0xd   : > { %s453_s16 = sshll.u32 %s592_s12, 2  ;;  %vm296_vm3 = vcmask 1031168   ;;  %v446_v12 = vld [vmem:[%s585_s2 + $0x4] sm:$0xf]  ;;  %v449_v13 = vld [vmem:[%s585_s2 + $0x8] sm:$0xf] }
   0xe   : > { %s215_s19 = scalar_lea.vmem %s583_s0, %s453_s16  ;;  %s455_s20 = sadd.s32 2, %s453_s16  ;;  %v337_v18 = vand.u32 127, %v336_v16  ;;  %vm235_vm5 = vcmask 15360   ;;  %v510_v26 = vmov 0.0   ;;  %vm346_vm6 = vcmask 7168  }
   0xf   : > { %v237_v0 = vld [vmem:[%s215_s19] sm:$0x3]  ;;  %s224_s25 = scalar_lea.vmem %s584_s1, %s455_s20  ;;  %s445_s5 = sshll.u32 %s592_s12, 3 }
  0x10   : > { %244 = vrot.lane.b32.xlu1 %v237_v0, %s508_s21  ;;  %292 = vrot.lane.b32.xlu0 %v237_v0, %s509_s22  ;;  %v238_v1 = vld [vmem:[%s224_s25] sm:$0x3]  ;;  %v275_v2 = vsel %vm254_vm0, %v237_v0, 0  ;;  %vm338_vm4 = vcmp.lt.s32.totalorder %v337_v18, 16  ;;  %s229_s8 = scalar_lea.vmem %s586_s3, %s445_s5 }
  0x11   : > { %284 = vmatpush.bf16.msra.mxu1 %v275_v2  ;;  %236 = vst.msk [vmem:[%s229_s8] sm:$0xff] %vm235_vm5, %v510_v26 }
  0x14   : > { %448 = vmatmul.msk.bf16.vlgmr.msra.gmra.mxu1 %vm250_vm1, %v239_v3 }
  0x18   : > { %246 = vrot.lane.b32.xlu1 %v238_v1, %s508_s21  ;;  %294 = vrot.lane.b32.xlu0 %v238_v1, %s509_s22  ;;  %v345_v28 = vld [vmem:[%s229_s8] sm:$0xff] }
  0x82   : > { %v245_v4 = vpop.permute.xlu1 %244  ;;  %v293_v5 = vpop.permute.xlu0 %292 }
  0x8a   : > { %v247_v6 = vpop.permute.xlu1 %246  ;;  %v295_v7 = vpop.permute.xlu0 %294 }
  0x8b   : > { %v249_v8 = vsel %vm248_vm2, %v245_v4, %v247_v6  ;;  %v297_v9 = vsel %vm296_vm3, %v293_v5, %v295_v7 }
  0x8c   : > { %v256_v10 = vsel %vm254_vm0, %v249_v8, 0  ;;  %v302_v11 = vsel %vm254_vm0, %v297_v9, 0 }
  0x8d   : > { %265 = vmatpush.bf16.msra.mxu0 %v256_v10  ;;  %311 = vmatpush.bf16.msra.mxu2 %v302_v11 }
  0x90   : > { %447 = vmatmul.msk.bf16.vlgmr.msra.gmra.mxu0 %vm250_vm1, %v446_v12  ;;  %450 = vmatmul.msk.bf16.vlgmr.msra.gmra.mxu2 %vm250_vm1, %v449_v13 }
  0x91   : > { %v286_v14 = vpop.f32.mrf.mxu1 }
  0x99   : > { %v288_v15 = vpop.f32.mrf.mxu1 }
 0x10d   : > { %v267_v17 = vpop.f32.mrf.mxu0 }
 0x10e   : > { %v287_v19 = vadd.f32 %v286_v14, %v267_v17 }
 0x113   : > { %v313_v20 = vpop.f32.mrf.mxu2 }
 0x114   : > { %v317_v21 = vadd.f32 %v313_v20, %v287_v19 }
 0x115   : > { %v269_v22 = vpop.f32.mrf.mxu0 }
 0x116   : > { %v339_v23 = vsel %vm338_vm4, %v317_v21, 0.0 }
 0x117   : > { %340 = vadd.xlane.f32.xlu2 %v339_v23  ;;  %v342_v25 = vmul.f32 %v339_v23, %v339_v23 }
 0x11b   : > { %v315_v24 = vpop.f32.mrf.mxu2 }
 0x11f   : > { %343 = vadd.xlane.f32.xlu2 %v342_v25 }
 0x18a   : > { %v341_v27 = vpop.xlane.xlu2 %340 }
 0x192   : > { %v344_v29 = vpop.xlane.xlu2 %343 }
 0x193   : > { %v347_v30 = vsel %vm346_vm6, %v341_v27, %v344_v29 }
 0x194   : > { %v348_v31 = vadd.f32 %v347_v30, %v345_v28 }
 0x196   : > { %350 = vst.msk [vmem:[%s229_s8] sm:$0xff] %vm235_vm5, %v348_v31 }
 0x197 PF: > { %s13_s14 = sadd.s32 1, %s506_s14   ;;  %s587_s12 = smov %s502_s13 }
 0x198   : > { %p10_p5 = scmp.ge.s32.totalorder %s13_s14, 4   ;;  %s588_s13 = smov %s590_s15 }
 0x19a   :  { %12 = sbr.rel (!%p10_p5) target bundleno = 2 (0x2), region = 79 }

// kernel: encoder_forward.6
= control target key start
LH: loop header
LB: loop body
LE: loop exit
PB: predicated region body
PF: predicated region fallthrough
CT: control target
= control target key end

     0   :  { %s596_s12 = smov 0   ;;  %s598_s13 = smov 0   ;;  %s652_s0 = inlined_call_operand.vmem [shape: bf16[2,8,256], index: 0, kind: input, shape index: {}, may-alias: {0,1}]   ;;  %s653_s1 = inlined_call_operand.vmem [shape: bf16[2,8,256], index: 1, kind: input, shape index: {}, may-alias: {0,1}]   ;;  %s654_s2 = inlined_call_operand.vmem [shape: bf16[3,16,8], index: 2, kind: input, shape index: {}]   ;;  %s655_s3 = inlined_call_operand.vmem [shape: f32[2,16,2], index: 3, kind: output, shape index: {}]  }
   0x1   :  { %s600_s14 = smov 0  }
   0x2 LB: > { %s25_s15 = sadd.s32 1, %s567_s13  ;;  %p486_p0 = scmp.ge.s32.totalorder %s571_s14, 1  ;;  %s571_s14 = sphi %s600_s14, %s13_s14   ;;  %s567_s13 = sphi %s598_s13, %s657_s13   ;;  %s563_s12 = sphi %s596_s12, %s656_s12  }
   0x3   : > { %p27_p1 = scmp.ge.s32.totalorder %s25_s15, 2  ;;  %p173_p2 = scmp.lt.s32.totalorder %s571_s14, 3 }
   0x5   : > { %s659_s15 = smov (%p27_p1, %s25_s15), 0  ;;  %p174_p3 = pnand %p486_p0, %p173_p2 }
   0x6   : > { %p209_p4 = scmp.lt.s32.totalorder (!%p174_p3), %s563_s12, 1  ;;  %s573_s21 = smov (!%p174_p3), 127  }
   0x7   : > { %177 = sbr.rel (%p174_p3) target bundleno = 409 (0x199), region = 32  ;;  %s574_s22 = smov (!%p174_p3), 126  }
   0xc   : > { %s661_s12 = smov (!%p209_p4, %s563_s12), 1  ;;  %vm264_vm0 = vcmask 1043456   ;;  %v518_v3 = vld [vmem:[%s654_s2] sm:$0xff]  ;;  %vm260_vm1 = vcmask 64512   ;;  %vm258_vm2 = vcmask 1039360   ;;  %vm319_vm3 = vcmask 1031168  }
   0xd   : > { %s514_s16 = sshll.u32 %s661_s12, 3  ;;  %v519_v12 = vld [vmem:[%s654_s2 + $0x8] sm:$0xff]  ;;  %v520_v13 = vld [vmem:[%s654_s2 + $0x10] sm:$0xff]  ;;  %v370_v14 = vlaneseq  ;;  %s517_s5 = sshll.u32 %s661_s12, 4  ;;  %vm237_vm5 = vcmask 15360   ;;  %v575_v30 = vmov 0.0  }
   0xe   : > { %s216_s19 = scalar_lea.vmem %s652_s0, %s514_s16  ;;  %s516_s20 = sadd.s32 4, %s514_s16  ;;  %vm387_vm6 = vcmask 7168  }
   0xf   : > { %v240_v0 = vld [vmem:[%s216_s19] sm:$0xf]  ;;  %s225_s25 = scalar_lea.vmem %s653_s1, %s516_s20  ;;  %v371_v17 = vand.u32 127, %v370_v14  ;;  %s231_s8 = scalar_lea.vmem %s655_s3, %s517_s5 }
  0x10   : > { %254 = vrot.lane.b32.xlu1 %v240_v0, %s573_s21  ;;  %315 = vrot.lane.b32.xlu0 %v240_v0, %s574_s22  ;;  %v241_v1 = vld [vmem:[%s225_s25] sm:$0xf]  ;;  %v291_v2 = vsel %vm264_vm0, %v240_v0, 0  ;;  %238 = vst.msk [vmem:[%s231_s8] sm:$0xff] %vm237_vm5, %v575_v30 }
  0x11   : > { %300 = vmatpush.bf16.msra.mxu1 %v291_v2  ;;  %vm372_vm4 = vcmp.lt.s32.totalorder %v371_v17, 14  ;;  %239 = vst.msk [vmem:[%s231_s8 + $0x8] sm:$0xff] %vm237_vm5, %v575_v30 }
  0x14   : > { %504 = vmatmul.msk.bf16.vlgmr.msra.gmra.mxu1 %vm260_vm1, %v518_v3 }
  0x17   : > { %v385_v32 = vld [vmem:[%s231_s8] sm:$0xff] }
  0x18   : > { %256 = vrot.lane.b32.xlu1 %v241_v1, %s573_s21  ;;  %317 = vrot.lane.b32.xlu0 %v241_v1, %s574_s22  ;;  %v386_v36 = vld [vmem:[%s231_s8 + $0x8] sm:$0xff] }
  0x82   : > { %v255_v4 = vpop.permute.xlu1 %254  ;;  %v316_v5 = vpop.permute.xlu0 %315 }
  0x8a   : > { %v257_v6 = vpop.permute.xlu1 %256  ;;  %v318_v7 = vpop.permute.xlu0 %317 }
  0x8b   : > { %v259_v8 = vsel %vm258_vm2, %v255_v4, %v257_v6  ;;  %v320_v9 = vsel %vm319_vm3, %v316_v5, %v318_v7 }
  0x8c   : > { %v266_v10 = vsel %vm264_vm0, %v259_v8, 0  ;;  %v325_v11 = vsel %vm264_vm0, %v320_v9, 0 }
  0x8d   : > { %275 = vmatpush.bf16.msra.mxu0 %v266_v10  ;;  %334 = vmatpush.bf16.msra.mxu2 %v325_v11 }
  0x90   : > { %499 = vmatmul.msk.bf16.vlgmr.msra.gmra.mxu0 %vm260_vm1, %v519_v12  ;;  %511 = vmatmul.msk.bf16.vlgmr.msra.gmra.mxu2 %vm260_vm1, %v520_v13 }
  0x91   : > { %v302_v16 = vpop.f32.mrf.mxu1 }
  0x99   : > { %v304_v24 = vpop.f32.mrf.mxu1 }
 0x10d   : > { %v277_v15 = vpop.f32.mrf.mxu0 }
 0x10e   : > { %v303_v18 = vadd.f32 %v302_v16, %v277_v15 }
 0x113   : > { %v336_v19 = vpop.f32.mrf.mxu2 }
 0x114   : > { %v341_v20 = vadd.f32 %v336_v19, %v303_v18 }
 0x115   : > { %v279_v22 = vpop.f32.mrf.mxu0 }
 0x116   : > { %v373_v21 = vsel %vm372_vm4, %v341_v20, 0.0  ;;  %v305_v25 = vadd.f32 %v304_v24, %v279_v22 }
 0x117   : > { %375 = vadd.xlane.f32.xlu2 %v373_v21  ;;  %v379_v23 = vmul.f32 %v373_v21, %v373_v21 }
 0x119   : > { %381 = vadd.xlane.f32.xlu0 %v379_v23 }
 0x11b   : > { %v338_v26 = vpop.f32.mrf.mxu2 }
 0x11c   : > { %v342_v27 = vadd.f32 %v338_v26, %v305_v25 }
 0x11e   : > { %v374_v28 = vsel %vm372_vm4, %v342_v27, 0.0 }
 0x11f   : > { %377 = vadd.xlane.f32.xlu2 %v374_v28  ;;  %v380_v29 = vmul.f32 %v374_v28, %v374_v28 }
 0x121   : > { %383 = vadd.xlane.f32.xlu1 %v380_v29 }
 0x18a   : > { %v376_v31 = vpop.xlane.xlu2 %375 }
 0x18c   : > { %v382_v33 = vpop.xlane.xlu0 %381 }
 0x18d   : > { %v388_v34 = vsel %vm387_vm6, %v376_v31, %v382_v33 }
 0x18e   : > { %v390_v35 = vadd.f32 %v388_v34, %v385_v32 }
 0x190   : > { %393 = vst.msk [vmem:[%s231_s8] sm:$0xff] %vm237_vm5, %v390_v35 }
 0x192   : > { %v378_v37 = vpop.xlane.xlu2 %377 }
 0x194   : > { %v384_v38 = vpop.xlane.xlu1 %383 }
 0x195   : > { %v389_v39 = vsel %vm387_vm6, %v378_v37, %v384_v38 }
 0x196   : > { %v391_v40 = vadd.f32 %v389_v39, %v386_v36 }
 0x198   : > { %394 = vst.msk [vmem:[%s231_s8 + $0x8] sm:$0xff] %vm237_vm5, %v391_v40 }
 0x199 PF: > { %s13_s14 = sadd.s32 1, %s571_s14   ;;  %s656_s12 = smov %s567_s13 }
 0x19a   : > { %p10_p5 = scmp.ge.s32.totalorder %s13_s14, 4   ;;  %s657_s13 = smov %s659_s15 }
 0x19c   :  { %12 = sbr.rel (!%p10_p5) target bundleno = 2 (0x2), region = 79 }

</bundles_post_ra>
